<compile_context>
chip_gen: v6e
topology: v6e:2x2x1
jax: 0.10.0
libtpu: 0.0.40
codegen_flags: <defaults>
</compile_context>

<pallas_src>
import jax
import jax.numpy as jnp
from jax.experimental import pallas as pl
from jax.experimental.pallas import tpu as pltpu

SEQ = 40        # Linear(80, 2) requires S * 2 == 80
FEATURES = 32   # feature_number (small test size)
HIDDEN = 128    # inner_head_features


def _round_up(a, m):
    return (a + m - 1) // m * m


def head_forward(x, params, *, tb_max=512):
    """Forward pass of Head. x: (B, S, F) f32. Returns (B, 1, 2) f32."""
    w1, b1, w2, b2, w3, b3 = params
    B, S, F = x.shape
    H = w1.shape[1]
    assert w3.shape[0] == 2 * S, "Flatten + Linear(80, 2) requires 2*S == 80"

    # ---- batch-tile selection ----
    # TB batch elements (= TB*S rows) per grid step.  For B >= 16 keep at
    # least two grid blocks (v7x has two TensorCores and the batch-tile axis
    # is "parallel") and keep TB a multiple of 8 (BlockSpec sublane rule).
    if B >= 16:
        nblk_target = max(2, pl.cdiv(B, tb_max))
        TB = _round_up(pl.cdiv(B, nblk_target), 8)
    else:
        TB = B                                     # single block == full dims
    nblk = pl.cdiv(B, TB)
    Bp = nblk * TB
    R = TB * S                                     # rows per grid step

    # ---- wrapper-side layout glue (plain XLA, outside the kernel) ----
    x2d = x.reshape(B * S, F)
    if Bp != B:
        x2d = jnp.pad(x2d, ((0, (Bp - B) * S), (0, 0)))
    x2d = x2d.astype(jnp.bfloat16)                 # halve HBM traffic
    w1b = w1.astype(jnp.bfloat16)
    w2b = w2.astype(jnp.bfloat16)                  # bf16 MXU matmul-2

    # Lane-aligned parity patterns of W3 (row-major Flatten of (S, 2) -> 80):
    #   wa[s, c] = W3[2s + c, 0],  wb[s, c] = W3[2s + c, 1]
    # so out[t, k] = sum_{s,c} y[t, s, c] * W3[2s+c, k] + b3[k] needs no
    # cross-lane broadcast of y inside the kernel.
    w3p = w3.reshape(S, 2, 2)
    wa = w3p[:, :, 0].astype(jnp.float32)          # (S, 2)
    wb = w3p[:, :, 1].astype(jnp.float32)          # (S, 2)

    b1r = b1.reshape(1, H).astype(jnp.float32)
    b2r = b2.reshape(1, 2).astype(jnp.float32)
    b3r = b3.reshape(1, 2).astype(jnp.float32)

    def kernel(x_ref, w1_ref, b1_ref, w2_ref, b2_ref, wa_ref, wb_ref, b3_ref,
               o_ref):
        # Linear(F, H) + bias + ReLU: one (TB*S, F) @ (F, H) bf16 MXU matmul,
        # f32 accumulation; bias add / ReLU stay f32 (v5e has no bf16 VPU).
        h = jnp.dot(x_ref[...], w1_ref[...], preferred_element_type=jnp.float32)
        h = jnp.maximum(h + b1_ref[...], 0.0)

        # Dropout(0.1): eval-mode identity.
        # TODO(synk): training-mode dropout (pltpu.prng_*) not implemented.

        # Linear(H, 2) + bias + ReLU: bf16 MXU matmul (h cast after the f32
        # bias+ReLU), f32 accumulation.
        y = jnp.dot(h.astype(jnp.bfloat16), w2_ref[...],
                    preferred_element_type=jnp.float32)
        y = jnp.maximum(y + b2_ref[...], 0.0)      # (R, 2) f32

        # Flatten + Linear(80, 2):
        #   out[t, k] = sum_{s,c} y3[t, s, c] * W3[2s + c, k] + b3[k]
        # (R, 2) -> (TB, S, 2) splits the sublane axis on 8-row tile
        # boundaries (S % 8 == 0) with the lane dim unchanged, so it is
        # layout-preserving (no VMEM copy).  wa/wb are lane-aligned with y3;
        # their (S,2) -> (TB,S,2) broadcast is over the leading dim only.
        y3 = y.reshape(TB, S, 2)
        wa_v = wa_ref[...]                         # (S, 2)
        wb_v = wb_ref[...]

        # Accumulate the weighted sum over S in 8-row (one sublane tile)
        # chunks: live R-scale tail intermediates stay ~TB vregs.
        accA = y3[:, 0:8, :] * wa_v[0:8, :]
        accB = y3[:, 0:8, :] * wb_v[0:8, :]
        for g in range(1, S // 8):
            lo, hi = 8 * g, 8 * (g + 1)
            yg = y3[:, lo:hi, :]
            accA = accA + yg * wa_v[lo:hi, :]
            accB = accB + yg * wb_v[lo:hi, :]

        sA = jnp.sum(accA, axis=1)                 # (TB, 2) -> out[:, 0] parts
        sB = jnp.sum(accB, axis=1)                 # (TB, 2) -> out[:, 1] parts
        out0 = jnp.sum(sA, axis=1, keepdims=True)  # (TB, 1)
        out1 = jnp.sum(sB, axis=1, keepdims=True)  # (TB, 1)

        b3_v = b3_ref[...]                         # (1, 2)
        o_ref[:, 0:1] = out0 + b3_v[:, 0:1]
        o_ref[:, 1:2] = out1 + b3_v[:, 1:2]

    out = pl.pallas_call(
        kernel,
        out_shape=jax.ShapeDtypeStruct((Bp, 2), jnp.float32),
        grid_spec=pltpu.PrefetchScalarGridSpec(
            num_scalar_prefetch=0,
            grid=(nblk,),
            in_specs=[
                pl.BlockSpec((R, F), lambda i: (i, 0)),    # x rows of this tile
                pl.BlockSpec((F, H), lambda i: (0, 0)),    # W1 (bf16)
                pl.BlockSpec((1, H), lambda i: (0, 0)),    # b1
                pl.BlockSpec((H, 2), lambda i: (0, 0)),    # W2 (bf16)
                pl.BlockSpec((1, 2), lambda i: (0, 0)),    # b2
                pl.BlockSpec((S, 2), lambda i: (0, 0)),    # W3 parity, k = 0
                pl.BlockSpec((S, 2), lambda i: (0, 0)),    # W3 parity, k = 1
                pl.BlockSpec((1, 2), lambda i: (0, 0)),    # b3
            ],
            out_specs=pl.BlockSpec((TB, 2), lambda i: (i, 0)),
        ),
        compiler_params=pltpu.CompilerParams(
            dimension_semantics=("parallel",),       # shard batch tiles (v7x)
            vmem_limit_bytes=48 * 1024 * 1024,       # < v7x's 64 MiB per TC
        ),
    )(x2d, w1b, b1r, w2b, b2r, wa, wb, b3r)

    return out[:B, None, :]                          # (B, 1, 2)  == unsqueeze(1)


def head_reference(x, params):
    w1, b1, w2, b2, w3, b3 = params
    h = jnp.maximum(x @ w1 + b1, 0.0)
    y = jnp.maximum(h @ w2 + b2, 0.0)        # (B, S, 2)
    yf = y.reshape(x.shape[0], -1)           # (B, 80)  (torch nn.Flatten)
    out = yf @ w3 + b3                       # (B, 2)
    return out[:, None, :]                   # unsqueeze(1)


def init_params(key, feature_number=FEATURES, hidden=HIDDEN):
    ks = jax.random.split(key, 6)
    w1 = 0.05 * jax.random.normal(ks[0], (feature_number, hidden), jnp.float32)
    b1 = 0.01 * jax.random.normal(ks[1], (hidden,), jnp.float32)
    w2 = 0.05 * jax.random.normal(ks[2], (hidden, 2), jnp.float32)
    b2 = 0.01 * jax.random.normal(ks[3], (2,), jnp.float32)
    w3 = 0.05 * jax.random.normal(ks[4], (2 * SEQ, 2), jnp.float32)   # Linear(80, 2)
    b3 = 0.01 * jax.random.normal(ks[5], (2,), jnp.float32)
    return (w1, b1, w2, b2, w3, b3)


if __name__ == "__main__":
    key = jax.random.PRNGKey(0)
    k_x, k_p = jax.random.split(key)

    B = 2
    x = jax.random.normal(k_x, (B, SEQ, FEATURES), jnp.float32)
    params = init_params(k_p)

    out = jax.block_until_ready(head_forward(x, params))
    ref = head_reference(x, params)

    assert out.shape == (B, 1, 2), out.shape
    # Kernel uses bf16 x/W1/W2/h with f32 accumulation vs the pure-f32 reference.
    assert jnp.allclose(out, ref, atol=1e-2, rtol=1e-2), (out, ref)

    print("KERNEL_OK")
</pallas_src>

<mosaic_0001>
module attributes {stable_mosaic.version = 11 : i64} {
  func.func @kernel(%arg0: i32, %arg1: memref<80x32xbf16, #tpu.memory_space<vmem>>, %arg2: memref<32x128xbf16, #tpu.memory_space<vmem>>, %arg3: memref<1x128xf32, #tpu.memory_space<vmem>>, %arg4: memref<128x2xbf16, #tpu.memory_space<vmem>>, %arg5: memref<1x2xf32, #tpu.memory_space<vmem>>, %arg6: memref<40x2xf32, #tpu.memory_space<vmem>>, %arg7: memref<40x2xf32, #tpu.memory_space<vmem>>, %arg8: memref<1x2xf32, #tpu.memory_space<vmem>>, %arg9: memref<2x2xf32, #tpu.memory_space<vmem>>) attributes {dimension_semantics = [#tpu.dimension_semantics<parallel>], iteration_bounds = array<i64: 1>, scalar_prefetch = 0 : i64, scratch_operands = 0 : i64, tpu.core_type = #tpu.core_type<tc>, window_params = [{transform_indices = @transform_0, window_bounds = array<i64: 80, 32>}, {pipeline_mode = #tpu.pipeline_mode<synchronous>, transform_indices = @transform_1, window_bounds = array<i64: 32, 128>}, {pipeline_mode = #tpu.pipeline_mode<synchronous>, transform_indices = @transform_2, window_bounds = array<i64: 1, 128>}, {pipeline_mode = #tpu.pipeline_mode<synchronous>, transform_indices = @transform_3, window_bounds = array<i64: 128, 2>}, {pipeline_mode = #tpu.pipeline_mode<synchronous>, transform_indices = @transform_4, window_bounds = array<i64: 1, 2>}, {pipeline_mode = #tpu.pipeline_mode<synchronous>, transform_indices = @transform_5, window_bounds = array<i64: 40, 2>}, {pipeline_mode = #tpu.pipeline_mode<synchronous>, transform_indices = @transform_6, window_bounds = array<i64: 40, 2>}, {pipeline_mode = #tpu.pipeline_mode<synchronous>, transform_indices = @transform_7, window_bounds = array<i64: 1, 2>}, {transform_indices = @transform_8, window_bounds = array<i64: 2, 2>}]} {
    %c0 = arith.constant 0 : index
    %c0_0 = arith.constant 0 : index
    %0 = vector.load %arg1[%c0, %c0_0] : memref<80x32xbf16, #tpu.memory_space<vmem>>, vector<80x32xbf16>
    %c0_1 = arith.constant 0 : index
    %c0_2 = arith.constant 0 : index
    %1 = vector.load %arg2[%c0_1, %c0_2] : memref<32x128xbf16, #tpu.memory_space<vmem>>, vector<32x128xbf16>
    %cst = arith.constant dense<0.000000e+00> : vector<80x128xf32>
    %2 = tpu.matmul %0, %1, %cst {dimension_numbers = #tpu.dot_dimension_numbers<[1], [0], [0], [1], [0, 0, 1, 1], [], []>} : vector<80x32xbf16>, vector<32x128xbf16>, vector<80x128xf32> -> vector<80x128xf32>
    %c0_3 = arith.constant 0 : index
    %c0_4 = arith.constant 0 : index
    %3 = vector.load %arg3[%c0_3, %c0_4] : memref<1x128xf32, #tpu.memory_space<vmem>>, vector<1x128xf32>
    %4 = vector.broadcast %3 : vector<1x128xf32> to vector<80x128xf32>
    %5 = arith.addf %2, %4 : vector<80x128xf32>
    %cst_5 = arith.constant 0.000000e+00 : f32
    %6 = vector.broadcast %cst_5 : f32 to vector<80x128xf32>
    %7 = arith.maximumf %5, %6 : vector<80x128xf32>
    %8 = arith.truncf %7 : vector<80x128xf32> to vector<80x128xbf16>
    %c0_6 = arith.constant 0 : index
    %c0_7 = arith.constant 0 : index
    %9 = vector.load %arg4[%c0_6, %c0_7] : memref<128x2xbf16, #tpu.memory_space<vmem>>, vector<128x2xbf16>
    %cst_8 = arith.constant dense<0.000000e+00> : vector<80x2xf32>
    %10 = tpu.matmul %8, %9, %cst_8 {dimension_numbers = #tpu.dot_dimension_numbers<[1], [0], [0], [1], [0, 0, 1, 1], [], []>} : vector<80x128xbf16>, vector<128x2xbf16>, vector<80x2xf32> -> vector<80x2xf32>
    %c0_9 = arith.constant 0 : index
    %c0_10 = arith.constant 0 : index
    %11 = vector.load %arg5[%c0_9, %c0_10] : memref<1x2xf32, #tpu.memory_space<vmem>>, vector<1x2xf32>
    %12 = vector.broadcast %11 : vector<1x2xf32> to vector<80x2xf32>
    %13 = arith.addf %10, %12 : vector<80x2xf32>
    %cst_11 = arith.constant 0.000000e+00 : f32
    %14 = vector.broadcast %cst_11 : f32 to vector<80x2xf32>
    %15 = arith.maximumf %13, %14 : vector<80x2xf32>
    %16 = vector.shape_cast %15 : vector<80x2xf32> to vector<2x40x2xf32>
    %c0_12 = arith.constant 0 : index
    %c0_13 = arith.constant 0 : index
    %17 = vector.load %arg6[%c0_12, %c0_13] : memref<40x2xf32, #tpu.memory_space<vmem>>, vector<40x2xf32>
    %c0_14 = arith.constant 0 : index
    %c0_15 = arith.constant 0 : index
    %18 = vector.load %arg7[%c0_14, %c0_15] : memref<40x2xf32, #tpu.memory_space<vmem>>, vector<40x2xf32>
    %19 = vector.extract_strided_slice %16 {offsets = [0, 0, 0], sizes = [2, 8, 2], strides = [1, 1, 1]} : vector<2x40x2xf32> to vector<2x8x2xf32>
    %20 = vector.extract_strided_slice %17 {offsets = [0, 0], sizes = [8, 2], strides = [1, 1]} : vector<40x2xf32> to vector<8x2xf32>
    %21 = vector.shape_cast %20 : vector<8x2xf32> to vector<1x8x2xf32>
    %22 = vector.broadcast %21 : vector<1x8x2xf32> to vector<2x8x2xf32>
    %23 = arith.mulf %19, %22 : vector<2x8x2xf32>
    %24 = vector.extract_strided_slice %16 {offsets = [0, 0, 0], sizes = [2, 8, 2], strides = [1, 1, 1]} : vector<2x40x2xf32> to vector<2x8x2xf32>
    %25 = vector.extract_strided_slice %18 {offsets = [0, 0], sizes = [8, 2], strides = [1, 1]} : vector<40x2xf32> to vector<8x2xf32>
    %26 = vector.shape_cast %25 : vector<8x2xf32> to vector<1x8x2xf32>
    %27 = vector.broadcast %26 : vector<1x8x2xf32> to vector<2x8x2xf32>
    %28 = arith.mulf %24, %27 : vector<2x8x2xf32>
    %29 = vector.extract_strided_slice %16 {offsets = [0, 8, 0], sizes = [2, 8, 2], strides = [1, 1, 1]} : vector<2x40x2xf32> to vector<2x8x2xf32>
    %30 = vector.extract_strided_slice %17 {offsets = [8, 0], sizes = [8, 2], strides = [1, 1]} : vector<40x2xf32> to vector<8x2xf32>
    %31 = vector.shape_cast %30 : vector<8x2xf32> to vector<1x8x2xf32>
    %32 = vector.broadcast %31 : vector<1x8x2xf32> to vector<2x8x2xf32>
    %33 = arith.mulf %29, %32 : vector<2x8x2xf32>
    %34 = arith.addf %23, %33 : vector<2x8x2xf32>
    %35 = vector.extract_strided_slice %18 {offsets = [8, 0], sizes = [8, 2], strides = [1, 1]} : vector<40x2xf32> to vector<8x2xf32>
    %36 = vector.shape_cast %35 : vector<8x2xf32> to vector<1x8x2xf32>
    %37 = vector.broadcast %36 : vector<1x8x2xf32> to vector<2x8x2xf32>
    %38 = arith.mulf %29, %37 : vector<2x8x2xf32>
    %39 = arith.addf %28, %38 : vector<2x8x2xf32>
    %40 = vector.extract_strided_slice %16 {offsets = [0, 16, 0], sizes = [2, 8, 2], strides = [1, 1, 1]} : vector<2x40x2xf32> to vector<2x8x2xf32>
    %41 = vector.extract_strided_slice %17 {offsets = [16, 0], sizes = [8, 2], strides = [1, 1]} : vector<40x2xf32> to vector<8x2xf32>
    %42 = vector.shape_cast %41 : vector<8x2xf32> to vector<1x8x2xf32>
    %43 = vector.broadcast %42 : vector<1x8x2xf32> to vector<2x8x2xf32>
    %44 = arith.mulf %40, %43 : vector<2x8x2xf32>
    %45 = arith.addf %34, %44 : vector<2x8x2xf32>
    %46 = vector.extract_strided_slice %18 {offsets = [16, 0], sizes = [8, 2], strides = [1, 1]} : vector<40x2xf32> to vector<8x2xf32>
    %47 = vector.shape_cast %46 : vector<8x2xf32> to vector<1x8x2xf32>
    %48 = vector.broadcast %47 : vector<1x8x2xf32> to vector<2x8x2xf32>
    %49 = arith.mulf %40, %48 : vector<2x8x2xf32>
    %50 = arith.addf %39, %49 : vector<2x8x2xf32>
    %51 = vector.extract_strided_slice %16 {offsets = [0, 24, 0], sizes = [2, 8, 2], strides = [1, 1, 1]} : vector<2x40x2xf32> to vector<2x8x2xf32>
    %52 = vector.extract_strided_slice %17 {offsets = [24, 0], sizes = [8, 2], strides = [1, 1]} : vector<40x2xf32> to vector<8x2xf32>
    %53 = vector.shape_cast %52 : vector<8x2xf32> to vector<1x8x2xf32>
    %54 = vector.broadcast %53 : vector<1x8x2xf32> to vector<2x8x2xf32>
    %55 = arith.mulf %51, %54 : vector<2x8x2xf32>
    %56 = arith.addf %45, %55 : vector<2x8x2xf32>
    %57 = vector.extract_strided_slice %18 {offsets = [24, 0], sizes = [8, 2], strides = [1, 1]} : vector<40x2xf32> to vector<8x2xf32>
    %58 = vector.shape_cast %57 : vector<8x2xf32> to vector<1x8x2xf32>
    %59 = vector.broadcast %58 : vector<1x8x2xf32> to vector<2x8x2xf32>
    %60 = arith.mulf %51, %59 : vector<2x8x2xf32>
    %61 = arith.addf %50, %60 : vector<2x8x2xf32>
    %62 = vector.extract_strided_slice %16 {offsets = [0, 32, 0], sizes = [2, 8, 2], strides = [1, 1, 1]} : vector<2x40x2xf32> to vector<2x8x2xf32>
    %63 = vector.extract_strided_slice %17 {offsets = [32, 0], sizes = [8, 2], strides = [1, 1]} : vector<40x2xf32> to vector<8x2xf32>
    %64 = vector.shape_cast %63 : vector<8x2xf32> to vector<1x8x2xf32>
    %65 = vector.broadcast %64 : vector<1x8x2xf32> to vector<2x8x2xf32>
    %66 = arith.mulf %62, %65 : vector<2x8x2xf32>
    %67 = arith.addf %56, %66 : vector<2x8x2xf32>
    %68 = vector.extract_strided_slice %18 {offsets = [32, 0], sizes = [8, 2], strides = [1, 1]} : vector<40x2xf32> to vector<8x2xf32>
    %69 = vector.shape_cast %68 : vector<8x2xf32> to vector<1x8x2xf32>
    %70 = vector.broadcast %69 : vector<1x8x2xf32> to vector<2x8x2xf32>
    %71 = arith.mulf %62, %70 : vector<2x8x2xf32>
    %72 = arith.addf %61, %71 : vector<2x8x2xf32>
    %cst_16 = arith.constant dense<0.000000e+00> : vector<2x2xf32>
    %73 = vector.multi_reduction <add>, %67, %cst_16 [1] : vector<2x8x2xf32> to vector<2x2xf32>
    %cst_17 = arith.constant dense<0.000000e+00> : vector<2x2xf32>
    %74 = vector.multi_reduction <add>, %72, %cst_17 [1] : vector<2x8x2xf32> to vector<2x2xf32>
    %cst_18 = arith.constant dense<0.000000e+00> : vector<2xf32>
    %75 = vector.multi_reduction <add>, %73, %cst_18 [1] : vector<2x2xf32> to vector<2xf32>
    %76 = vector.shape_cast %75 : vector<2xf32> to vector<2x1xf32>
    %cst_19 = arith.constant dense<0.000000e+00> : vector<2xf32>
    %77 = vector.multi_reduction <add>, %74, %cst_19 [1] : vector<2x2xf32> to vector<2xf32>
    %78 = vector.shape_cast %77 : vector<2xf32> to vector<2x1xf32>
    %c0_20 = arith.constant 0 : index
    %c0_21 = arith.constant 0 : index
    %79 = vector.load %arg8[%c0_20, %c0_21] : memref<1x2xf32, #tpu.memory_space<vmem>>, vector<1x2xf32>
    %80 = vector.extract_strided_slice %79 {offsets = [0, 0], sizes = [1, 1], strides = [1, 1]} : vector<1x2xf32> to vector<1x1xf32>
    %81 = vector.broadcast %80 : vector<1x1xf32> to vector<2x1xf32>
    %82 = arith.addf %76, %81 : vector<2x1xf32>
    %c0_22 = arith.constant 0 : index
    %c0_23 = arith.constant 0 : index
    %83 = vector.load %arg9[%c0_22, %c0_23] : memref<2x2xf32, #tpu.memory_space<vmem>>, vector<2x1xf32>
    tpu.vector_store %arg9[%c0_22, %c0_23], %82 {strides = array<i32>} : memref<2x2xf32, #tpu.memory_space<vmem>>, vector<2x1xf32>,
    %84 = vector.extract_strided_slice %79 {offsets = [0, 1], sizes = [1, 1], strides = [1, 1]} : vector<1x2xf32> to vector<1x1xf32>
    %85 = vector.broadcast %84 : vector<1x1xf32> to vector<2x1xf32>
    %86 = arith.addf %78, %85 : vector<2x1xf32>
    %c0_24 = arith.constant 0 : index
    %c1 = arith.constant 1 : index
    %87 = vector.load %arg9[%c0_24, %c1] : memref<2x2xf32, #tpu.memory_space<vmem>>, vector<2x1xf32>
    tpu.vector_store %arg9[%c0_24, %c1], %86 {strides = array<i32>} : memref<2x2xf32, #tpu.memory_space<vmem>>, vector<2x1xf32>,
    return
  }
  func.func @transform_0(%arg0: i32) -> (i32, i32) {
    %c0_i32 = arith.constant 0 : i32
    %c0_i32_0 = arith.constant 0 : i32
    return %arg0, %c0_i32 : i32, i32
  }
  func.func @transform_1(%arg0: i32) -> (i32, i32) {
    %c0_i32 = arith.constant 0 : i32
    %c0_i32_0 = arith.constant 0 : i32
    %c0_i32_1 = arith.constant 0 : i32
    return %c0_i32, %c0_i32_0 : i32, i32
  }
  func.func @transform_2(%arg0: i32) -> (i32, i32) {
    %c0_i32 = arith.constant 0 : i32
    %c0_i32_0 = arith.constant 0 : i32
    %c0_i32_1 = arith.constant 0 : i32
    return %c0_i32, %c0_i32_0 : i32, i32
  }
  func.func @transform_3(%arg0: i32) -> (i32, i32) {
    %c0_i32 = arith.constant 0 : i32
    %c0_i32_0 = arith.constant 0 : i32
    %c0_i32_1 = arith.constant 0 : i32
    return %c0_i32, %c0_i32_0 : i32, i32
  }
  func.func @transform_4(%arg0: i32) -> (i32, i32) {
    %c0_i32 = arith.constant 0 : i32
    %c0_i32_0 = arith.constant 0 : i32
    %c0_i32_1 = arith.constant 0 : i32
    return %c0_i32, %c0_i32_0 : i32, i32
  }
  func.func @transform_5(%arg0: i32) -> (i32, i32) {
    %c0_i32 = arith.constant 0 : i32
    %c0_i32_0 = arith.constant 0 : i32
    %c0_i32_1 = arith.constant 0 : i32
    return %c0_i32, %c0_i32_0 : i32, i32
  }
  func.func @transform_6(%arg0: i32) -> (i32, i32) {
    %c0_i32 = arith.constant 0 : i32
    %c0_i32_0 = arith.constant 0 : i32
    %c0_i32_1 = arith.constant 0 : i32
    return %c0_i32, %c0_i32_0 : i32, i32
  }
  func.func @transform_7(%arg0: i32) -> (i32, i32) {
    %c0_i32 = arith.constant 0 : i32
    %c0_i32_0 = arith.constant 0 : i32
    %c0_i32_1 = arith.constant 0 : i32
    return %c0_i32, %c0_i32_0 : i32, i32
  }
  func.func @transform_8(%arg0: i32) -> (i32, i32) {
    %c0_i32 = arith.constant 0 : i32
    %c0_i32_0 = arith.constant 0 : i32
    return %arg0, %c0_i32 : i32, i32
  }
}

</mosaic_0001>

<bundles_post_ra>
// kernel: tpu_custom_call.1
= control target key start
LH: loop header
LB: loop body
LE: loop exit
PB: predicated region body
PF: predicated region fallthrough
CT: control target
= control target key end

     0   :  { %v624_v1 = vmov 0.0   ;;  %vm625_vm0 = vmmov 0   ;;  %vm89_vm1 = vcmask 261120   ;;  %s818_s0 = inlined_call_operand.vmem [shape: bf16[80,32], index: 0, kind: input, shape index: {}]   ;;  %s819_s1 = inlined_call_operand.vmem [shape: bf16[32,128], index: 1, kind: input, shape index: {}]   ;;  %s820_s2 = inlined_call_operand.vmem [shape: f32[1,128], index: 2, kind: input, shape index: {}]   ;;  %s821_s3 = inlined_call_operand.vmem [shape: bf16[128,2], index: 3, kind: input, shape index: {}]   ;;  %s822_s4 = inlined_call_operand.vmem [shape: f32[1,2], index: 4, kind: input, shape index: {}]   ;;  %s823_s5 = inlined_call_operand.vmem [shape: f32[40,2], index: 5, kind: input, shape index: {}]   ;;  %s824_s6 = inlined_call_operand.vmem [shape: f32[40,2], index: 6, kind: input, shape index: {}]   ;;  %s825_s7 = inlined_call_operand.vmem [shape: f32[1,2], index: 7, kind: input, shape index: {}]   ;;  %s826_s8 = inlined_call_operand.hbm [shape: f32[2,2], index: 8, kind: output, shape index: {}]  }
   0x1   :  { %v587_v0 = vld [vmem:[%s819_s1 + $0x8] sm:$0xff]   ;;  %508 = vmatprep.subr.bf16.mxu0 %v624_v1  ;;  %568 = vmatprep.subr.bf16.mxu1 %v624_v1  ;;  %v588_v2 = vld [vmem:[%s819_s1] sm:$0xff]   ;;  %v594_v4 = vld [vmem:[%s821_s3 + $0x38] sm:$0xff]  }
   0x2   :  { %509 = vmatpush3.bf16.msra.mxu0 %v587_v0  ;;  %512 = vmatprep.mubr.msk.bf16.mxu0 %vm625_vm0, %v624_v1  ;;  %v589_v3 = vld [vmem:[%s818_s0] sm:$0xff]   ;;  %v595_v5 = vld [vmem:[%s821_s3 + $0x30] sm:$0xff]   ;;  %v590_v6 = vld [vmem:[%s818_s0 + $0x8] sm:$0xff]  }
   0x3   :  { %510 = vmatprep.subr.bf16.mxu0 %v624_v1  ;;  %552 = vmatprep.mubr.msk.bf16.mxu1 %vm625_vm0, %v624_v1  ;;  %v596_v7 = vld [vmem:[%s821_s3 + $0x28] sm:$0xff]  }
   0x4   :  { %576 = vmatpush3.bf16.msra.mxu1 %v594_v4 }
   0x5   :  { %569 = vmatprep.subr.bf16.mxu1 %v624_v1 }
   0x6   :  { %511 = vmatpush3.bf16.msra.mxu0 %v588_v2 }
   0x7   :  { %532 = vmatprep.subr.bf16.mxu0 %v624_v1 }
   0x8   :  { %577 = vmatpush3.bf16.msra.mxu1 %v595_v5 }
   0x9   :  { %513 = vmatmul.mubr.msk.bf16.vlgmr.msra.gmra.mxu0 %vm89_vm1, %v589_v3  ;;  %570 = vmatprep.subr.bf16.mxu1 %v624_v1 }
   0xa   :  { %516 = vmatprep.mubr.msk.bf16.mxu0 %vm625_vm0, %v624_v1  ;;  %533 = vmatpush3.bf16.msra.mxu0 %v594_v4 }
   0xb   :  { %534 = vmatprep.subr.bf16.mxu0 %v624_v1 }
   0xe   :  { %535 = vmatpush3.bf16.msra.mxu0 %v595_v5 }
   0xf   :  { %13 = vsyncpa [#allocation3], 0  ;;  %536 = vmatprep.subr.bf16.mxu0 %v624_v1  ;;  %578 = vmatpush3.bf16.msra.mxu1 %v596_v7  ;;  %v597_v8 = vld [vmem:[%s821_s3 + $0x20] sm:$0xff]   ;;  %v591_v9 = vld [vmem:[%s818_s0 + $0x10] sm:$0xff]   ;;  %vm393_vm2 = vcmask 15360   ;;  %vm424_vm3 = vcmask 1041409  }
  0x10   :  { %571 = vmatprep.subr.bf16.mxu1 %v624_v1  ;;  %v598_v10 = vld [vmem:[%s821_s3 + $0x18] sm:$0xff]   ;;  %v593_v12 = vld [vmem:[%s818_s0 + $0x20] sm:$0xff]   ;;  %v599_v13 = vld [vmem:[%s821_s3 + $0x10] sm:$0xff]   ;;  %vm427_vm4 = vcmask 9216   ;;  %vm446_vm5 = vcmask 1024   ;;  %s626_s9 = smov [#allocation2]  }
  0x11   :  { %517 = vmatmul.mubr.msk.bf16.gmra.mxu0 %vm89_vm1, %v590_v6  ;;  %v592_v11 = vld [vmem:[%s818_s0 + $0x18] sm:$0xff]   ;;  %v600_v14 = vld [vmem:[%s821_s3 + $0x8] sm:$0xff]   ;;  %v601_v15 = vld [vmem:[%s821_s3] sm:$0xff]   ;;  %s457_s0 = sshll.u32 %s626_s9, 4  ;;  %vm449_vm6 = vcmask 9224   ;;  %s458_s0 = int_to_ptr.vmem [resolvable:$true] %s457_s0 }
  0x12   :  { %520 = vmatprep.mubr.msk.bf16.mxu0 %vm625_vm0, %v624_v1  ;;  %537 = vmatpush3.bf16.msra.mxu0 %v596_v7  ;;  %v465_v16 = vld [vmem:[%s820_s2] ss:$0 sm:$0xff]  ;;  %s602_s10 = scalar_lea.vmem %s458_s0, 32  ;;  %p607_p1 = scmp.lt.s32.totalorder %s458_s0, %s458_s0 }
  0x13   :  { %538 = vmatprep.subr.bf16.mxu0 %v624_v1  ;;  %579 = vmatpush3.bf16.msra.mxu1 %v597_v8  ;;  %v766_v4 = vld [vmem:[%s822_s4] ss:$0 sm:$0xff]  ;;  %p603_p0 = scmp.ne.s32.totalorder %s458_s0, %s602_s10  ;;  %p608_p2 = scmp.lt.s32.totalorder %s602_s10, %s602_s10 }
  0x14   :  { %572 = vmatprep.subr.bf16.mxu1 %v624_v1 }
  0x15   :  { %p609_p3 = por %p608_p2, %p607_p1 }
  0x16   :  { %539 = vmatpush3.bf16.msra.mxu0 %v597_v8 }
  0x17   :  { %540 = vmatprep.subr.bf16.mxu0 %v624_v1  ;;  %580 = vmatpush3.bf16.msra.mxu1 %v598_v10  ;;  %p610_p4 = pnand %p609_p3, %p603_p0 }
  0x18   :  { %573 = vmatprep.subr.bf16.mxu1 %v624_v1 }
  0x19   :  { %521 = vmatmul.mubr.msk.bf16.gmra.mxu0 %vm89_vm1, %v591_v9 }
  0x1a   :  { %524 = vmatprep.mubr.msk.bf16.mxu0 %vm625_vm0, %v624_v1  ;;  %541 = vmatpush3.bf16.msra.mxu0 %v598_v10 }
  0x1b   :  { %542 = vmatprep.subr.bf16.mxu0 %v624_v1  ;;  %581 = vmatpush3.bf16.msra.mxu1 %v599_v13 }
  0x1c   :  { %574 = vmatprep.subr.bf16.mxu1 %v624_v1 }
  0x1e   :  { %543 = vmatpush3.bf16.msra.mxu0 %v599_v13 }
  0x1f   :  { %544 = vmatprep.subr.bf16.mxu0 %v624_v1  ;;  %582 = vmatpush3.bf16.msra.mxu1 %v600_v14 }
  0x20   :  { %575 = vmatprep.subr.bf16.mxu1 %v624_v1 }
  0x21   :  { %525 = vmatmul.mubr.msk.bf16.gmra.mxu0 %vm89_vm1, %v592_v11 }
  0x22   :  { %528 = vmatprep.mubr.msk.bf16.mxu0 %vm625_vm0, %v624_v1  ;;  %545 = vmatpush3.bf16.msra.mxu0 %v600_v14 }
  0x23   :  { %546 = vmatprep.subr.bf16.mxu0 %v624_v1  ;;  %583 = vmatpush3.bf16.msra.mxu1 %v601_v15 }
  0x26   :  { %547 = vmatpush3.bf16.msra.mxu0 %v601_v15  ;;  %v353_v15 = vld [vmem:[%s824_s6 + $0x8] sm:$0xff] }
  0x29   :  { %529 = vmatmul.mubr.msk.bf16.gmra.mxu0 %vm89_vm1, %v593_v12  ;;  %v348_v12 = vld [vmem:[%s823_s5 + $0x8] sm:$0xff] }
  0x2a   :  { %548 = vmatprep.mubr.msk.bf16.mxu0 %vm625_vm0, %v624_v1 }
  0xc9   :  { %v139_v17 = vpop.f32.mrf.mxu0 }
  0xca   :  { %v140_v19 = vadd.f32 %v465_v16, %v139_v17 }
  0xcb   :  { %v514_v18 = vpop.f32.mrf.mxu0 }
  0xcc   :  { %v178_v23 = vmax.f32 %v140_v19, 0.0  ;;  %v347_v18 = vld [vmem:[%s823_s5] sm:$0xff]  ;;  %v349_v19 = vld [vmem:[%s823_s5 + $0x10] sm:$0xff] }
  0xcd   :  { %v142_v20 = vpop.f32.mrf.mxu0 }
  0xce   :  { %v143_v21 = vadd.f32 %v465_v16, %v142_v20 }
  0xcf   :  { %v515_v22 = vpop.f32.mrf.mxu0 }
  0xd0   :  { %v179_v24 = vmax.f32 %v143_v21, 0.0  ;;  %v352_v21 = vld [vmem:[%s824_s6] sm:$0xff] }
  0xd1   :  { %v147_v25 = vpop.f32.mrf.mxu0 }
  0xd2   :  { %v188_v26 = vpack.c.bf16 %v179_v24, %v178_v23  ;;  %v148_v28 = vadd.f32 %v465_v16, %v147_v25  ;;  %v354_v23 = vld [vmem:[%s824_s6 + $0x10] sm:$0xff] }
  0xd3   :  { %v518_v27 = vpop.f32.mrf.mxu0 }
  0xd4   :  { %549 = vmatmul.mubr.bf16.vlgmr.msra.gmra.mxu0 %v188_v26  ;;  %v180_v32 = vmax.f32 %v148_v28, 0.0  ;;  %v350_v26 = vld [vmem:[%s823_s5 + $0x18] sm:$0xff] }
  0xd5   :  { %v150_v29 = vpop.f32.mrf.mxu0 }
  0xd6   :  { %v151_v30 = vadd.f32 %v465_v16, %v150_v29 }
  0xd7   :  { %v519_v31 = vpop.f32.mrf.mxu0 }
  0xd8   :  { %v181_v33 = vmax.f32 %v151_v30, 0.0  ;;  %v355_v30 = vld [vmem:[%s824_s6 + $0x18] sm:$0xff] }
  0xd9   :  { %v155_v34 = vpop.f32.mrf.mxu0 }
  0xda   :  { %v189_v35 = vpack.c.bf16 %v181_v33, %v180_v32  ;;  %v156_v37 = vadd.f32 %v465_v16, %v155_v34  ;;  %v351_v34 = vld [vmem:[%s823_s5 + $0x20] sm:$0xff] }
  0xdb   :  { %v522_v36 = vpop.f32.mrf.mxu0 }
  0xdc   :  { %553 = vmatmul.mubr.bf16.vlgmr.msra.gmra.mxu1 %v189_v35  ;;  %v182_v41 = vmax.f32 %v156_v37, 0.0 }
  0xdd   :  { %v158_v38 = vpop.f32.mrf.mxu0  ;;  %556 = vmatprep.mubr.msk.bf16.mxu1 %vm625_vm0, %v624_v1 }
  0xde   :  { %v159_v39 = vadd.f32 %v465_v16, %v158_v38  ;;  %v356_v38 = vld [vmem:[%s824_s6 + $0x20] sm:$0xff] }
  0xdf   :  { %v523_v40 = vpop.f32.mrf.mxu0 }
  0xe0   :  { %v183_v42 = vmax.f32 %v159_v39, 0.0 }
  0xe1   :  { %v163_v43 = vpop.f32.mrf.mxu0 }
  0xe2   :  { %v190_v44 = vpack.c.bf16 %v183_v42, %v182_v41  ;;  %v164_v46 = vadd.f32 %v465_v16, %v163_v43 }
  0xe3   :  { %v526_v45 = vpop.f32.mrf.mxu0 }
  0xe4   :  { %557 = vmatmul.mubr.bf16.gmra.mxu1 %v190_v44  ;;  %v184_v50 = vmax.f32 %v164_v46, 0.0 }
  0xe5   :  { %v166_v47 = vpop.f32.mrf.mxu0  ;;  %560 = vmatprep.mubr.msk.bf16.mxu1 %vm625_vm0, %v624_v1 }
  0xe6   :  { %v167_v48 = vadd.f32 %v465_v16, %v166_v47 }
  0xe7   :  { %v527_v49 = vpop.f32.mrf.mxu0 }
  0xe8   :  { %v185_v51 = vmax.f32 %v167_v48, 0.0 }
  0xe9   :  { %v171_v52 = vpop.f32.mrf.mxu0 }
  0xea   :  { %v191_v53 = vpack.c.bf16 %v185_v51, %v184_v50  ;;  %v172_v55 = vadd.f32 %v465_v16, %v171_v52 }
  0xeb   :  { %v530_v54 = vpop.f32.mrf.mxu0 }
  0xec   :  { %561 = vmatmul.mubr.bf16.gmra.mxu1 %v191_v53  ;;  %v186_v59 = vmax.f32 %v172_v55, 0.0 }
  0xed   :  { %v174_v56 = vpop.f32.mrf.mxu0  ;;  %564 = vmatprep.mubr.msk.bf16.mxu1 %vm625_vm0, %v624_v1 }
  0xee   :  { %v175_v57 = vadd.f32 %v465_v16, %v174_v56 }
  0xef   :  { %v531_v58 = vpop.f32.mrf.mxu0 }
  0xf0   :  { %v187_v60 = vmax.f32 %v175_v57, 0.0 }
  0xf2   :  { %v192_v61 = vpack.c.bf16 %v187_v60, %v186_v59 }
  0xf4   :  { %565 = vmatmul.mubr.bf16.gmra.mxu1 %v192_v61 }
 0x194   :  { %v298_v62 = vpop.f32.mrf.mxu0 }
 0x195   :  { %v299_v7 = vadd.f32 %v766_v4, %v298_v62 }
 0x196   :  { %v550_v63 = vpop.f32.mrf.mxu0 }
 0x197   :  { %v337_v14 = vmax.f32 %v299_v7, 0.0 }
 0x198   :  { %v301_v0 = vpop.f32.mrf.mxu0 }
 0x199   :  { %v302_v6 = vadd.f32 %v766_v4, %v301_v0  ;;  %v357_v28 = vmul.f32 %v347_v18, %v337_v14  ;;  %v359_v32 = vmul.f32 %v352_v21, %v337_v14 }
 0x19a   :  { %v551_v2 = vpop.f32.mrf.mxu0 }
 0x19b   :  { %v338_v10 = vmax.f32 %v302_v6, 0.0 }
 0x19c   :  { %v306_v3 = vpop.f32.mrf.mxu1 }
 0x19d   :  { %v307_v8 = vadd.f32 %v766_v4, %v306_v3  ;;  %v361_v22 = vmul.f32 %v348_v12, %v338_v10  ;;  %v365_v25 = vmul.f32 %v353_v15, %v338_v10 }
 0x19e   :  { %v554_v5 = vpop.f32.mrf.mxu1 }
 0x19f   :  { %v339_v16 = vmax.f32 %v307_v8, 0.0  ;;  %v363_v36 = vadd.f32 %v361_v22, %v357_v28  ;;  %v367_v39 = vadd.f32 %v365_v25, %v359_v32 }
 0x1a0   :  { %v309_v1 = vpop.f32.mrf.mxu1 }
 0x1a1   :  { %v310_v11 = vadd.f32 %v766_v4, %v309_v1  ;;  %v369_v29 = vmul.f32 %v349_v19, %v339_v16  ;;  %v373_v33 = vmul.f32 %v354_v23, %v339_v16 }
 0x1a2   :  { %v555_v9 = vpop.f32.mrf.mxu1 }
 0x1a3   :  { %v340_v24 = vmax.f32 %v310_v11, 0.0  ;;  %v371_v42 = vadd.f32 %v369_v29, %v363_v36  ;;  %v375_v44 = vadd.f32 %v373_v33, %v367_v39 }
 0x1a4   :  { %v314_v13 = vpop.f32.mrf.mxu1 }
 0x1a5   :  { %v315_v17 = vadd.f32 %v766_v4, %v314_v13  ;;  %v377_v37 = vmul.f32 %v350_v26, %v340_v24  ;;  %v381_v40 = vmul.f32 %v355_v30, %v340_v24 }
 0x1a6   :  { %v558_v20 = vpop.f32.mrf.mxu1 }
 0x1a7   :  { %v341_v31 = vmax.f32 %v315_v17, 0.0  ;;  %v379_v49 = vadd.f32 %v377_v37, %v371_v42  ;;  %v383_v50 = vadd.f32 %v381_v40, %v375_v44 }
 0x1a8   :  { %v317_v27 = vpop.f32.mrf.mxu1 }
 0x1a9   :  { %v385_v43 = vmul.f32 %v351_v34, %v341_v31  ;;  %v389_v45 = vmul.f32 %v356_v38, %v341_v31  ;;  %v318_v46 = vadd.f32 %v766_v4, %v317_v27 }
 0x1aa   :  { %v559_v35 = vpop.f32.mrf.mxu1 }
 0x1ab   :  { %v387_v53 = vadd.f32 %v385_v43, %v379_v49  ;;  %v391_v55 = vadd.f32 %v389_v45, %v383_v50  ;;  %v342_v56 = vmax.f32 %v318_v46, 0.0 }
 0x1ac   :  { %v322_v41 = vpop.f32.mrf.mxu1 }
 0x1ad   :  { %v323_v47 = vadd.f32 %v766_v4, %v322_v41  ;;  %v394_v61 = vsel %vm393_vm2, %v387_v53, 0.0  ;;  %v408_v0 = vsel %vm393_vm2, %v391_v55, 0.0  ;;  %v358_v2 = vmul.f32 %v347_v18, %v342_v56  ;;  %v487_v53 = vld [vmem:[%s825_s7] ss:$0 sm:$0xff] }
 0x1ae   :  { %v562_v48 = vpop.f32.mrf.mxu1  ;;  %v360_v5 = vmul.f32 %v352_v21, %v342_v56  ;;  %v395_v8 = vrot.slane %v394_v61, 4  ;;  %v409_v16 = vrot.slane %v408_v0, 4 }
 0x1af   :  { %v343_v51 = vmax.f32 %v323_v47, 0.0 }
 0x1b0   :  { %v325_v52 = vpop.f32.mrf.mxu1  ;;  %v396_v24 = vadd.f32 %v395_v8, %v394_v61 }
 0x1b1   :  { %v326_v54 = vadd.f32 %v766_v4, %v325_v52  ;;  %v362_v59 = vmul.f32 %v348_v12, %v343_v51  ;;  %v366_v62 = vmul.f32 %v353_v15, %v343_v51 }
 0x1b2   :  { %v563_v57 = vpop.f32.mrf.mxu1  ;;  %v397_v29 = vrot.slane %v396_v24, 2 }
 0x1b3   :  { %v344_v58 = vmax.f32 %v326_v54, 0.0  ;;  %v364_v9 = vadd.f32 %v362_v59, %v358_v2  ;;  %v368_v11 = vadd.f32 %v366_v62, %v360_v5 }
 0x1b4   :  { %v330_v60 = vpop.f32.mrf.mxu1  ;;  %v398_v36 = vadd.f32 %v397_v29, %v396_v24 }
 0x1b5   :  { %v331_v63 = vadd.f32 %v766_v4, %v330_v60  ;;  %v370_v6 = vmul.f32 %v349_v19, %v344_v58  ;;  %v374_v1 = vmul.f32 %v354_v23, %v344_v58  ;;  %v410_v23 = vadd.f32 %v409_v16, %v408_v0 }
 0x1b6   :  { %v566_v3 = vpop.f32.mrf.mxu1  ;;  %v399_v41 = vrot.slane %v398_v36, 1 }
 0x1b7   :  { %v345_v7 = vmax.f32 %v331_v63, 0.0  ;;  %v372_v17 = vadd.f32 %v370_v6, %v364_v9  ;;  %v376_v20 = vadd.f32 %v374_v1, %v368_v11  ;;  %v411_v32 = vrot.slane %v410_v23, 2 }
 0x1b8   :  { %v333_v10 = vpop.f32.mrf.mxu1  ;;  %v400_v45 = vadd.f32 %v399_v41, %v398_v36 }
 0x1b9   :  { %v378_v13 = vmul.f32 %v350_v26, %v345_v7  ;;  %v382_v12 = vmul.f32 %v355_v30, %v345_v7  ;;  %v334_v14 = vadd.f32 %v766_v4, %v333_v10  ;;  %v412_v39 = vadd.f32 %v411_v32, %v410_v23 }
 0x1ba   :  { %v567_v15 = vpop.f32.mrf.mxu1 }
 0x1bb   :  { %v346_v22 = vmax.f32 %v334_v14, 0.0  ;;  %v380_v18 = vadd.f32 %v378_v13, %v372_v17  ;;  %v384_v25 = vadd.f32 %v382_v12, %v376_v20  ;;  %v413_v43 = vrot.slane %v412_v39, 1 }
 0x1bd   :  { %v386_v21 = vmul.f32 %v351_v34, %v346_v22  ;;  %v390_v19 = vmul.f32 %v356_v38, %v346_v22  ;;  %v414_v49 = vadd.f32 %v413_v43, %v412_v39 }
 0x1bf   :  { %v388_v27 = vadd.f32 %v386_v21, %v380_v18  ;;  %v392_v28 = vadd.f32 %v390_v19, %v384_v25 }
 0x1c1   :  { %v401_v31 = vsel %vm393_vm2, %v388_v27, 0.0  ;;  %v415_v26 = vsel %vm393_vm2, %v392_v28, 0.0 }
 0x1c2   :  { %v402_v30 = vrot.slane %v401_v31, 4  ;;  %v416_v4 = vrot.slane %v415_v26, 4 }
 0x1c4   :  { %v403_v33 = vadd.f32 %v402_v30, %v401_v31  ;;  %v417_v35 = vadd.f32 %v416_v4, %v415_v26 }
 0x1c6   :  { %v404_v37 = vrot.slane %v403_v33, 2  ;;  %v418_v40 = vrot.slane %v417_v35, 2 }
 0x1c8   :  { %v405_v34 = vadd.f32 %v404_v37, %v403_v33  ;;  %v419_v38 = vadd.f32 %v418_v40, %v417_v35 }
 0x1ca   :  { %v406_v42 = vrot.slane %v405_v34, 1  ;;  %v420_v44 = vrot.slane %v419_v38, 1 }
 0x1cc   :  { %v407_v46 = vadd.f32 %v406_v42, %v405_v34  ;;  %v421_v47 = vadd.f32 %v420_v44, %v419_v38 }
 0x1ce   :  { %v425_v48 = vsel %vm424_vm3, %v407_v46, %v400_v45  ;;  %v433_v51 = vsel %vm424_vm3, %v421_v47, %v414_v49 }
 0x1cf   :  { %v428_v50 = vsel %vm427_vm4, %v425_v48, 0.0  ;;  %v435_v52 = vsel %vm427_vm4, %v433_v51, 0.0 }
 0x1d0   :  { %429 = vadd.xlane.f32.xlu0 %v428_v50 }
 0x1d4   :  { %436 = vadd.xlane.f32.xlu0 %v435_v52 }
 0x259   :  { %v430_v54 = vpop.xlane.xlu0 %429 }
 0x25a   :  { %v445_v55 = vadd.f32 %v487_v53, %v430_v54 }
 0x25c   :  { %447 = vst.msk [vmem:[#allocation2] sm:$0x3] %vm446_vm5, %v445_v55 }
 0x25d   :  { %v437_v56 = vpop.xlane.xlu0 %436 }
 0x25e   :  { %v448_v57 = vadd.f32 %v487_v53, %v437_v56 }
 0x260   :  { %450 = vst.msk [vmem:[#allocation2] sm:$0x3] %vm449_vm6, %v448_v57 }
 0x261   :  { %613 = shalt.err (!%p610_p4)
}
 0x262   :  { %460 = dma.vmem_to_hbm [thread:$0]  %s458_s0, 32, %s826_s8, [#allocation3]  }
 0x263   :  { %622 = dma.done.wait [#allocation3], 32  }
 0x264   :  { %623 = vsyncadd [#allocation3], 4294967264 }
 0x265   :  { %464 = vsyncpa [#allocation3], 1 }

</bundles_post_ra>
